<compile_context>
chip_gen: v6e
topology: v6e:2x2x1
jax: 0.10.0
libtpu: 0.0.40
codegen_flags: <defaults>
</compile_context>

<pallas_src>
import functools

import jax
import jax.numpy as jnp
from jax import lax
from jax.experimental import pallas as pl
from jax.experimental.pallas import tpu as pltpu


# --------------------------------------------------------------------------- #
# Kernel
# --------------------------------------------------------------------------- #
def _patch_nce_kernel(lpos_ref, qT_ref, k_ref, loss_ref, m_ref, l_ref, *, inv_T):
    # lpos_ref : (Bt, 1, P)  f32   positive logits, already scaled by 1/T
    # qT_ref   : (Bt, D, P)  input dtype, queries with P on the lane axis
    # k_ref    : (Bt, tk, D) input dtype, keys for this key tile
    # loss_ref : (Bt, 1, P)  f32   output (written on the last key tile)
    # m_ref/l_ref : (Bt, 1, P) f32 running max / running sum (online logsumexp)
    kt = pl.program_id(1)
    tk = k_ref.shape[1]

    @pl.when(kt == 0)
    def _init():
        # Seed the running stats with the positive logit (class-0 term of CE).
        m_ref[...] = lpos_ref[...]
        l_ref[...] = jnp.ones_like(l_ref)

    # Negative logits for this key tile: s[b, j, i] = <k_{kt*tk+j}, q_i> / T.
    # MXU matmul in the input dtype (bf16 stays bf16), f32 accumulation; the
    # temperature is applied to the f32 result (matches the reference exactly).
    s = lax.dot_general(
        k_ref[...], qT_ref[...],
        dimension_numbers=(((2,), (1,)), ((0,), (0,))),
        preferred_element_type=jnp.float32,
    ) * jnp.float32(inv_T)                                     # (Bt, tk, P)

    # masked_fill of the self-pair (key index == query index) with -10.0 / T.
    key_idx = lax.broadcasted_iota(jnp.int32, s.shape[1:], 0) + kt * tk
    qry_idx = lax.broadcasted_iota(jnp.int32, s.shape[1:], 1)
    s = jnp.where((key_idx == qry_idx)[None], jnp.float32(-10.0 * inv_T), s)

    # Online logsumexp over the key (sublane) axis; stats stay lane-major.
    m_prev = m_ref[...]
    m_new = jnp.maximum(m_prev, jnp.max(s, axis=1, keepdims=True))
    l_ref[...] = (l_ref[...] * jnp.exp(m_prev - m_new)
                  + jnp.sum(jnp.exp(s - m_new), axis=1, keepdims=True))
    m_ref[...] = m_new

    @pl.when(kt == pl.num_programs(1) - 1)
    def _finish():
        # CrossEntropy(reduction='none', target=0):
        #   loss = logsumexp([pos, masked negs]) - pos
        loss_ref[...] = m_ref[...] + jnp.log(l_ref[...]) - lpos_ref[...]


# --------------------------------------------------------------------------- #
# Tile planning (generation-aware)
# --------------------------------------------------------------------------- #
def _round_up(x, m):
    return ((x + m - 1) // m) * m


def _physical_vmem_bytes():
    try:
        return int(pltpu.get_tpu_info().vmem_capacity_bytes)
    except Exception:
        return 64 * 1024 * 1024          # conservative fallback (v7x per-TC)


def _plan_tiles(B, P, D, itemsize, budget_bytes):
    """Pick (batch tile Bt, key tile tk).

    Maximize per-step block volume (fewer grid steps, less per-step overhead)
    subject to: double-buffered input blocks + scratch + f32 score temporaries
    fit in the VMEM budget.  When B >= 2, prefer >= 2 batch-parallel grid steps
    so dual-TensorCore chips (v7x) get 'parallel' work (costs ~0.35us on
    single-TC chips, negligible).
    """
    P128 = _round_up(P, 128)
    D8 = _round_up(D, 8)
    D128 = _round_up(D, 128)
    vec = 8 * P128 * 4                       # one (·, 1, P) f32 row block / batch elem

    def usage(bt, tk):
        tk8 = _round_up(tk, 8)
        q_blk = 2 * bt * D8 * P128 * itemsize        # qT (Bt,D,P), double-buffered
        k_blk = 2 * bt * tk8 * D128 * itemsize       # k  (Bt,tk,D), double-buffered
        io = 4 * bt * vec                            # l_pos + out, double-buffered
        scratch = 2 * bt * vec                       # running max / running sum
        temps = 4 * bt * tk8 * P128 * 4              # scores + exp + mask temporaries
        return q_blk + k_blk + io + scratch + temps

    tks = sorted({P} | {t for t in (4096, 2048, 1024, 512, 256, 128, 64, 32, 16, 8)
                        if t < P and P % t == 0}, reverse=True)
    bts = sorted({d for d in range(1, B + 1) if B % d == 0}, reverse=True)

    def best(bt_cands):
        fits = [(bt, tk) for bt in bt_cands for tk in tks
                if usage(bt, tk) <= budget_bytes]
        if not fits:
            return None
        return max(fits, key=lambda c: (c[0] * c[1], c[1]))

    if B >= 2:
        choice = best([bt for bt in bts if B // bt >= 2])
        if choice is not None:
            return choice
    choice = best(bts)
    if choice is not None:
        return choice
    return 1, min(tks)      # smallest blocks; rely on vmem_limit headroom


# --------------------------------------------------------------------------- #
# Wrapper
# --------------------------------------------------------------------------- #
def _patch_nce_pallas(feat_q, feat_k, batch_size, nce_T, tile_override=None):
    N, D = feat_q.shape
    B = int(batch_size)
    assert N % B == 0, "N must be batch_size * num_patches"
    P = N // B
    inv_T = float(1.0 / float(nce_T))

    k = lax.stop_gradient(feat_k)              # feat_k.detach()

    # Positive logit, computed exactly like the reference (elementwise, f32),
    # scaled by 1/T in the wrapper.  Cheap (N,D) pass; avoids any f32 copies of
    # the full blocks inside the kernel.
    l_pos = (jnp.sum(feat_q * k, axis=-1, dtype=jnp.float32) * inv_T)
    l_pos = l_pos.reshape(B, 1, P)

    # Pre-transpose q so the kernel dot is MXU-natural (no per-step transpose)
    # and the per-query stats / output are lane-major.
    qT = jnp.swapaxes(feat_q.reshape(B, P, D), 1, 2)     # (B, D, P)
    kb = k.reshape(B, P, D)                              # (B, P, D)

    itemsize = feat_q.dtype.itemsize
    phys_vmem = _physical_vmem_bytes()
    vmem_limit = int(phys_vmem * 0.8)
    if tile_override is not None:
        Bt, tk = tile_override
    else:
        Bt, tk = _plan_tiles(B, P, D, itemsize, int(vmem_limit * 0.7))
    assert B % Bt == 0 and P % tk == 0
    G, KT = B // Bt, P // tk

    cost = pl.CostEstimate(
        flops=2 * B * P * P * D,
        transcendentals=B * P * (P + 2),
        bytes_accessed=int(2 * B * P * D * itemsize + 2 * B * P * 4),
    )

    kernel = functools.partial(_patch_nce_kernel, inv_T=inv_T)
    # TODO(synk): for P < 128 the (Bt,1,P) output stores are lane-masked; folding
    # Bt*P onto the lane axis would make them dense but needs an extra relayout.
    loss = pl.pallas_call(
        kernel,
        out_shape=jax.ShapeDtypeStruct((B, 1, P), jnp.float32),
        grid=(G, KT),
        in_specs=[
            pl.BlockSpec((Bt, 1, P), lambda g, kt: (g, 0, 0)),    # l_pos / T
            pl.BlockSpec((Bt, D, P), lambda g, kt: (g, 0, 0)),    # q^T (resident per g)
            pl.BlockSpec((Bt, tk, D), lambda g, kt: (g, kt, 0)),  # key tile
        ],
        out_specs=pl.BlockSpec((Bt, 1, P), lambda g, kt: (g, 0, 0)),
        scratch_shapes=[pltpu.VMEM((Bt, 1, P), jnp.float32),      # running max
                        pltpu.VMEM((Bt, 1, P), jnp.float32)],     # running sum
        compiler_params=pltpu.CompilerParams(
            dimension_semantics=("parallel", "arbitrary"),
            vmem_limit_bytes=vmem_limit),
        cost_estimate=cost,
    )(l_pos, qT, kb)
    return loss.reshape(N)


# --------------------------------------------------------------------------- #
# Pure-JAX reference mirroring the PyTorch code path
# --------------------------------------------------------------------------- #
def _patch_nce_ref(feat_q, feat_k, batch_size, nce_T):
    N, D = feat_q.shape
    B = int(batch_size)
    P = N // B
    feat_k = lax.stop_gradient(feat_k)
    l_pos = jnp.sum(feat_q * feat_k, axis=-1, keepdims=True)              # (N, 1)
    q = feat_q.reshape(B, P, D)
    k = feat_k.reshape(B, P, D)
    l_neg = jnp.einsum("bpd,bqd->bpq", q, k)                              # (B, P, P)
    eye = jnp.eye(P, dtype=bool)[None]
    l_neg = jnp.where(eye, -10.0, l_neg).reshape(N, P)
    out = jnp.concatenate([l_pos, l_neg], axis=1) / nce_T                 # (N, P+1)
    return jax.nn.logsumexp(out, axis=1) - out[:, 0]


# --------------------------------------------------------------------------- #
# Public entry point: Pallas forward, analytic backward (feat_k detached)
# --------------------------------------------------------------------------- #
@functools.partial(jax.custom_vjp, nondiff_argnums=(2, 3))
def patch_nce_loss(feat_q, feat_k, batch_size, nce_T):
    """JAX/Pallas equivalent of PatchNCELoss.forward(feat_q, feat_k) -> (N,) f32."""
    return _patch_nce_pallas(feat_q, feat_k, batch_size, nce_T)


def _patch_nce_fwd(feat_q, feat_k, batch_size, nce_T):
    loss = _patch_nce_pallas(feat_q, feat_k, batch_size, nce_T)
    # Save the loss: the row logsumexp is recovered as loss + l_pos/T, so the
    # backward never re-runs a logsumexp / (N, P+1) concat pass.
    return loss, (feat_q, feat_k, loss)


def _patch_nce_bwd(batch_size, nce_T, residuals, g):
    feat_q, feat_k, loss = residuals
    N, D = feat_q.shape
    B = int(batch_size)
    P = N // B
    inv_T = 1.0 / float(nce_T)

    k = lax.stop_gradient(feat_k)
    l_pos = jnp.sum(feat_q * k, axis=-1, dtype=jnp.float32) * inv_T        # (N,)
    lse = loss.astype(jnp.float32) + l_pos                                 # saved logsumexp

    qb = feat_q.reshape(B, P, D)
    kb = k.reshape(B, P, D)
    s = jnp.einsum("bpd,bqd->bpq", qb, kb,
                   preferred_element_type=jnp.float32) * inv_T             # (B, P, P)
    w = jnp.exp(s - lse.reshape(B, P, 1))                                  # softmax weights
    w_pos = jnp.exp(l_pos - lse).reshape(B, P, 1)
    eye = jnp.eye(P, dtype=bool)[None]
    # diagonal entry (masked in fwd, no q-dependence) is replaced by (w_pos - 1)
    w = jnp.where(eye, w_pos - 1.0, w)

    gb = g.reshape(B, P, 1).astype(jnp.float32)
    dq = jnp.einsum("bpq,bqd->bpd", gb * w, kb.astype(jnp.float32)) * inv_T
    # feat_k is detached in the forward pass -> zero gradient.
    return dq.reshape(N, D).astype(feat_q.dtype), jnp.zeros_like(feat_k)


patch_nce_loss.defvjp(_patch_nce_fwd, _patch_nce_bwd)


# --------------------------------------------------------------------------- #
# Demo / self-test
# --------------------------------------------------------------------------- #
if __name__ == "__main__":
    # synthetic config (deterministic, no checkpoint)
    batch_size = 2        # conf.train.batch_size
    nce_T = 0.07          # conf.train.gan.optimizer.nce_T
    num_patches = 64
    dim = 32
    N = batch_size * num_patches

    key = jax.random.PRNGKey(0)
    kq, kk = jax.random.split(key)
    feat_q = jax.random.normal(kq, (N, dim), dtype=jnp.float32)
    feat_k = jax.random.normal(kk, (N, dim), dtype=jnp.float32)

    # forward
    loss = patch_nce_loss(feat_q, feat_k, batch_size, nce_T)
    loss = jax.block_until_ready(loss)
    ref = _patch_nce_ref(feat_q, feat_k, batch_size, nce_T)
    assert loss.shape == (N,)
    assert jnp.allclose(loss, ref, rtol=1e-4, atol=1e-4), (loss, ref)

    # forced key-axis tiling (exercises the online-logsumexp / flash path)
    N2 = batch_size * 256
    kq2, kk2 = jax.random.split(jax.random.PRNGKey(1))
    fq2 = jax.random.normal(kq2, (N2, dim), dtype=jnp.float32)
    fk2 = jax.random.normal(kk2, (N2, dim), dtype=jnp.float32)
    loss2 = _patch_nce_pallas(fq2, fk2, batch_size, nce_T, tile_override=(1, 128))
    loss2 = jax.block_until_ready(loss2)
    ref2 = _patch_nce_ref(fq2, fk2, batch_size, nce_T)
    assert jnp.allclose(loss2, ref2, rtol=1e-3, atol=1e-3)

    # backward (custom_vjp): gradients flow to feat_q, feat_k is detached.
    # Tolerance is modest because the backward reuses the kernel's saved row
    # logsumexp (tiny fwd rounding propagates into the softmax weights).
    g_kernel = jax.grad(
        lambda q: jnp.sum(patch_nce_loss(q, feat_k, batch_size, nce_T)))(feat_q)
    g_kernel = jax.block_until_ready(g_kernel)
    g_ref = jax.grad(
        lambda q: jnp.sum(_patch_nce_ref(q, feat_k, batch_size, nce_T)))(feat_q)
    assert jnp.allclose(g_kernel, g_ref, rtol=2e-3, atol=2e-3)

    # bf16 features: matmul stays bf16 on the MXU (f32 accumulation) — smoke run
    loss_bf16 = patch_nce_loss(feat_q.astype(jnp.bfloat16),
                               feat_k.astype(jnp.bfloat16), batch_size, nce_T)
    loss_bf16 = jax.block_until_ready(loss_bf16)
    assert loss_bf16.shape == (N,)
    assert bool(jnp.all(jnp.isfinite(loss_bf16)))

    print("KERNEL_OK")
</pallas_src>

<mosaic_0001>
module attributes {stable_mosaic.version = 11 : i64} {
  func.func @_patch_nce_kernel(%arg0: i32, %arg1: i32, %arg2: memref<1x1x64xf32, #tpu.memory_space<vmem>>, %arg3: memref<1x32x64xf32, #tpu.memory_space<vmem>>, %arg4: memref<1x64x32xf32, #tpu.memory_space<vmem>>, %arg5: memref<1x1x64xf32, #tpu.memory_space<vmem>>, %arg6: memref<1x1x64xf32, #tpu.memory_space<vmem>>, %arg7: memref<1x1x64xf32, #tpu.memory_space<vmem>>) attributes {dimension_semantics = [#tpu.dimension_semantics<parallel>, #tpu.dimension_semantics<arbitrary>], iteration_bounds = array<i64: 2, 1>, scalar_prefetch = 0 : i64, scratch_operands = 2 : i64, tpu.core_type = #tpu.core_type<tc>, window_params = [{transform_indices = @transform_0, window_bounds = array<i64: 1, 1, 64>}, {transform_indices = @transform_1, window_bounds = array<i64: 1, 32, 64>}, {transform_indices = @transform_2, window_bounds = array<i64: 1, 64, 32>}, {transform_indices = @transform_3, window_bounds = array<i64: 1, 1, 64>}]} {
    %c0_i32 = arith.constant 0 : i32
    %0 = arith.cmpi eq, %arg1, %c0_i32 : i32
    %1 = arith.extui %0 : i1 to i32
    %c0_i32_0 = arith.constant 0 : i32
    %2 = arith.cmpi ne, %1, %c0_i32_0 : i32
    scf.if %2 {
      %c0_24 = arith.constant 0 : index
      %c0_25 = arith.constant 0 : index
      %c0_26 = arith.constant 0 : index
      %36 = vector.load %arg2[%c0_24, %c0_25, %c0_26] : memref<1x1x64xf32, #tpu.memory_space<vmem>>, vector<1x1x64xf32>
      %c0_27 = arith.constant 0 : index
      %c0_28 = arith.constant 0 : index
      %c0_29 = arith.constant 0 : index
      %37 = vector.load %arg6[%c0_27, %c0_28, %c0_29] : memref<1x1x64xf32, #tpu.memory_space<vmem>>, vector<1x1x64xf32>
      tpu.vector_store %arg6[%c0_27, %c0_28, %c0_29], %36 {strides = array<i32>} : memref<1x1x64xf32, #tpu.memory_space<vmem>>, vector<1x1x64xf32>,
      %cst_30 = arith.constant 1.000000e+00 : f32
      %38 = vector.broadcast %cst_30 : f32 to vector<1x1x64xf32>
      %c0_31 = arith.constant 0 : index
      %c0_32 = arith.constant 0 : index
      %c0_33 = arith.constant 0 : index
      %39 = vector.load %arg7[%c0_31, %c0_32, %c0_33] : memref<1x1x64xf32, #tpu.memory_space<vmem>>, vector<1x1x64xf32>
      tpu.vector_store %arg7[%c0_31, %c0_32, %c0_33], %38 {strides = array<i32>} : memref<1x1x64xf32, #tpu.memory_space<vmem>>, vector<1x1x64xf32>,
    } else {
    }
    %c0 = arith.constant 0 : index
    %c0_1 = arith.constant 0 : index
    %c0_2 = arith.constant 0 : index
    %3 = vector.load %arg4[%c0, %c0_1, %c0_2] : memref<1x64x32xf32, #tpu.memory_space<vmem>>, vector<1x64x32xf32>
    %c0_3 = arith.constant 0 : index
    %c0_4 = arith.constant 0 : index
    %c0_5 = arith.constant 0 : index
    %4 = vector.load %arg3[%c0_3, %c0_4, %c0_5] : memref<1x32x64xf32, #tpu.memory_space<vmem>>, vector<1x32x64xf32>
    %cst = arith.constant dense<0.000000e+00> : vector<1x64x64xf32>
    %5 = tpu.matmul %3, %4, %cst {dimension_numbers = #tpu.dot_dimension_numbers<[2], [1], [1], [2], [0, 0, 0, 1, 1, 2], [0], [0]>} : vector<1x64x32xf32>, vector<1x32x64xf32>, vector<1x64x64xf32> -> vector<1x64x64xf32>
    %cst_6 = arith.constant 14.2857141 : f32
    %6 = vector.broadcast %cst_6 : f32 to vector<1x64x64xf32>
    %7 = arith.mulf %5, %6 : vector<1x64x64xf32>
    %8 = tpu.iota {dimensions = array<i32: 0>} : vector<64x64xi32>
    %c64_i32 = arith.constant 64 : i32
    %9 = arith.muli %arg1, %c64_i32 : i32
    %10 = vector.broadcast %9 : i32 to vector<64x64xi32>
    %11 = arith.addi %8, %10 : vector<64x64xi32>
    %12 = tpu.iota {dimensions = array<i32: 1>} : vector<64x64xi32>
    %13 = arith.cmpi eq, %11, %12 : vector<64x64xi32>
    %14 = vector.shape_cast %13 : vector<64x64xi1> to vector<1x64x64xi1>
    %cst_7 = arith.constant -142.857147 : f32
    %15 = vector.broadcast %cst_7 : f32 to vector<1x64x64xf32>
    %16 = arith.select %14, %15, %7 : vector<1x64x64xi1>, vector<1x64x64xf32>
    %c0_8 = arith.constant 0 : index
    %c0_9 = arith.constant 0 : index
    %c0_10 = arith.constant 0 : index
    %17 = vector.load %arg6[%c0_8, %c0_9, %c0_10] : memref<1x1x64xf32, #tpu.memory_space<vmem>>, vector<1x1x64xf32>
    %cst_11 = arith.constant dense<0xFF800000> : vector<1x64xf32>
    %18 = vector.multi_reduction <maximumf>, %16, %cst_11 [1] : vector<1x64x64xf32> to vector<1x64xf32>
    %19 = vector.shape_cast %18 : vector<1x64xf32> to vector<1x1x64xf32>
    %20 = arith.maximumf %17, %19 : vector<1x1x64xf32>
    %c0_12 = arith.constant 0 : index
    %c0_13 = arith.constant 0 : index
    %c0_14 = arith.constant 0 : index
    %21 = vector.load %arg7[%c0_12, %c0_13, %c0_14] : memref<1x1x64xf32, #tpu.memory_space<vmem>>, vector<1x1x64xf32>
    %22 = arith.subf %17, %20 : vector<1x1x64xf32>
    %23 = math.exp %22 : vector<1x1x64xf32>
    %24 = arith.mulf %21, %23 : vector<1x1x64xf32>
    %25 = vector.broadcast %20 : vector<1x1x64xf32> to vector<1x64x64xf32>
    %26 = arith.subf %16, %25 : vector<1x64x64xf32>
    %27 = math.exp %26 : vector<1x64x64xf32>
    %cst_15 = arith.constant dense<0.000000e+00> : vector<1x64xf32>
    %28 = vector.multi_reduction <add>, %27, %cst_15 [1] : vector<1x64x64xf32> to vector<1x64xf32>
    %29 = vector.shape_cast %28 : vector<1x64xf32> to vector<1x1x64xf32>
    %30 = arith.addf %24, %29 : vector<1x1x64xf32>
    %c0_16 = arith.constant 0 : index
    %c0_17 = arith.constant 0 : index
    %c0_18 = arith.constant 0 : index
    %31 = vector.load %arg7[%c0_16, %c0_17, %c0_18] : memref<1x1x64xf32, #tpu.memory_space<vmem>>, vector<1x1x64xf32>
    tpu.vector_store %arg7[%c0_16, %c0_17, %c0_18], %30 {strides = array<i32>} : memref<1x1x64xf32, #tpu.memory_space<vmem>>, vector<1x1x64xf32>,
    %c0_19 = arith.constant 0 : index
    %c0_20 = arith.constant 0 : index
    %c0_21 = arith.constant 0 : index
    %32 = vector.load %arg6[%c0_19, %c0_20, %c0_21] : memref<1x1x64xf32, #tpu.memory_space<vmem>>, vector<1x1x64xf32>
    tpu.vector_store %arg6[%c0_19, %c0_20, %c0_21], %20 {strides = array<i32>} : memref<1x1x64xf32, #tpu.memory_space<vmem>>, vector<1x1x64xf32>,
    %c0_i32_22 = arith.constant 0 : i32
    %33 = arith.cmpi eq, %arg1, %c0_i32_22 : i32
    %34 = arith.extui %33 : i1 to i32
    %c0_i32_23 = arith.constant 0 : i32
    %35 = arith.cmpi ne, %34, %c0_i32_23 : i32
    scf.if %35 {
      %c0_24 = arith.constant 0 : index
      %c0_25 = arith.constant 0 : index
      %c0_26 = arith.constant 0 : index
      %36 = vector.load %arg6[%c0_24, %c0_25, %c0_26] : memref<1x1x64xf32, #tpu.memory_space<vmem>>, vector<1x1x64xf32>
      %c0_27 = arith.constant 0 : index
      %c0_28 = arith.constant 0 : index
      %c0_29 = arith.constant 0 : index
      %37 = vector.load %arg7[%c0_27, %c0_28, %c0_29] : memref<1x1x64xf32, #tpu.memory_space<vmem>>, vector<1x1x64xf32>
      %38 = math.log %37 : vector<1x1x64xf32>
      %39 = arith.addf %36, %38 : vector<1x1x64xf32>
      %c0_30 = arith.constant 0 : index
      %c0_31 = arith.constant 0 : index
      %c0_32 = arith.constant 0 : index
      %40 = vector.load %arg2[%c0_30, %c0_31, %c0_32] : memref<1x1x64xf32, #tpu.memory_space<vmem>>, vector<1x1x64xf32>
      %41 = arith.subf %39, %40 : vector<1x1x64xf32>
      %c0_33 = arith.constant 0 : index
      %c0_34 = arith.constant 0 : index
      %c0_35 = arith.constant 0 : index
      %42 = vector.load %arg5[%c0_33, %c0_34, %c0_35] : memref<1x1x64xf32, #tpu.memory_space<vmem>>, vector<1x1x64xf32>
      tpu.vector_store %arg5[%c0_33, %c0_34, %c0_35], %41 {strides = array<i32>} : memref<1x1x64xf32, #tpu.memory_space<vmem>>, vector<1x1x64xf32>,
    } else {
    }
    return
  }
  func.func @transform_0(%arg0: i32, %arg1: i32) -> (i32, i32, i32) {
    %c0_i32 = arith.constant 0 : i32
    %c0_i32_0 = arith.constant 0 : i32
    %c0_i32_1 = arith.constant 0 : i32
    return %arg0, %c0_i32, %c0_i32_0 : i32, i32, i32
  }
  func.func @transform_1(%arg0: i32, %arg1: i32) -> (i32, i32, i32) {
    %c0_i32 = arith.constant 0 : i32
    %c0_i32_0 = arith.constant 0 : i32
    %c0_i32_1 = arith.constant 0 : i32
    return %arg0, %c0_i32, %c0_i32_0 : i32, i32, i32
  }
  func.func @transform_2(%arg0: i32, %arg1: i32) -> (i32, i32, i32) {
    %c0_i32 = arith.constant 0 : i32
    %c0_i32_0 = arith.constant 0 : i32
    return %arg0, %arg1, %c0_i32 : i32, i32, i32
  }
  func.func @transform_3(%arg0: i32, %arg1: i32) -> (i32, i32, i32) {
    %c0_i32 = arith.constant 0 : i32
    %c0_i32_0 = arith.constant 0 : i32
    %c0_i32_1 = arith.constant 0 : i32
    return %arg0, %c0_i32, %c0_i32_0 : i32, i32, i32
  }
}

</mosaic_0001>

<bundles_post_ra>
// kernel: tpu_custom_call.1
= control target key start
LH: loop header
LB: loop body
LE: loop exit
PB: predicated region body
PF: predicated region fallthrough
CT: control target
= control target key end

     0   :  { %8 = vsyncpa [#allocation5], 0  ;;  %s1017_s0 = inlined_call_operand.vmem [shape: f32[2,1,64], index: 0, kind: input, shape index: {}]   ;;  %s1018_s1 = inlined_call_operand.vmem [shape: f32[2,32,64], index: 1, kind: input, shape index: {}]   ;;  %s1019_s2 = inlined_call_operand.vmem [shape: f32[2,64,32], index: 2, kind: input, shape index: {}]   ;;  %s1020_s3 = inlined_call_operand.hbm [shape: f32[2,1,64], index: 3, kind: output, shape index: {}]  }
   0x1   :  { %10 = vsyncpa [#allocation5 + $0x1], 0  ;;  %s861_s12 = smov 0   ;;  %s863_s13 = smov 0  }
   0x2   :  { %s865_s14 = smov 0   ;;  %s867_s15 = smov 0  }
   0x3   :  { %s869_s16 = smov 0   ;;  %s871_s17 = smov 0  }
   0x4 LB: > { %s623_s18 = sadd.s32 4294967295, %s837_s17   ;;  %s624_s19 = sadd.s32 4294967294, %s837_s17   ;;  %s837_s17 = sphi %s871_s17, %s16_s17   ;;  %s833_s16 = sphi %s869_s16, %s1027_s16   ;;  %s829_s15 = sphi %s867_s15, %s1026_s15   ;;  %s825_s14 = sphi %s865_s14, %s1025_s14   ;;  %s821_s13 = sphi %s863_s13, %s1024_s13   ;;  %s817_s12 = sphi %s861_s12, %s1023_s12  }
   0x5   : > { %s28_s20 = sadd.s32 1, %s833_s16  ;;  %s115_s21 = sadd.s32 1, %s825_s14 }
   0x6   : > { %p30_p0 = scmp.ge.s32.totalorder %s28_s20, 2  ;;  %p125_p1 = scmp.ne.s32.totalorder %s825_s14, %s821_s13 }
   0x7   : > { %p126_p2 = scmp.eq.s32.totalorder %s623_s18, 1  ;;  %p131_p3 = scmp.ne.s32.totalorder %s821_s13, %s817_s12 }
   0x8   : > { %s1029_s20 = smov (%p30_p0, %s28_s20), 0  ;;  %p132_p5 = scmp.eq.s32.totalorder %s624_s19, 1 }
   0x9   : > { %p901_p4 = por %p126_p2, %p125_p1  ;;  %s112_s23 = ssub.s32 %s833_s16, %s1029_s20 }
   0xa   : > { %p627_p6 = scmp.ge.s32.totalorder %s837_s17, 1  ;;  %p113_p7 = scmp.eq.s32.totalorder %s112_s23, 0 }
   0xb   : > { %p908_p8 = por %p132_p5, %p131_p3  ;;  %p177_p9 = scmp.lt.s32.totalorder %s837_s17, 3 }
   0xc   : > { %s914_s25 = scalar_select %p113_p7, %s825_s14, %s115_s21  }
   0xd   : > { %p178_p10 = pnand %p627_p6, %p177_p9 }
   0xe   : > { %p212_p11 = scmp.lt.s32.totalorder (!%p178_p10), %s829_s15, 1  ;;  %s210_s11 = sand.u32 (!%p178_p10), 1, %s821_s13  }
   0xf   : > { %181 = sbr.rel (%p178_p10) target bundleno = 349 (0x15d), region = 32  ;;  %s640_s18 = sshll.u32 (!%p178_p10), %s829_s15, 4 }
  0x10   : > { %s211_s19 = scalar_lea.vmem (!%p178_p10), [#allocation4], %s210_s11  ;;  %s521_s28 = scalar_lea.sflag (!%p178_p10), [#allocation5], %s210_s11 }
  0x11   : > { %s533_s21 = sshll.u32 (!%p178_p10), %s211_s19, 4  ;;  %s534_s21 = int_to_ptr.vmem [resolvable:$true] %s533_s21 }
  0x12   : > { %s761_s29 = scalar_lea.vmem (!%p178_p10), %s534_s21, 16 }
  0x13   : > { %p762_p12 = scmp.ne.s32.totalorder (!%p178_p10), %s534_s21, %s761_s29 }
  0x14   : > { %s918_s26 = scalar_select %p212_p11, %s829_s15, 1  ;;  %vm250_vm0 = vcmask 261120   ;;  %vm235_vm1 = vcmask 516096   ;;  %v839_v13 = vmov 1.0   ;;  %v388_v14 = vlaneseq }
  0x15   : > { %237 = vst.msk [vmem:[#allocation3] sm:$0x1] %vm235_vm1, %v839_v13  ;;  %vm426_vm8 = vcmask 523264   ;;  %p763_p13 = pnand %p762_p12, %p901_p4 }
  0x16   : > { %s643_s27 = sshll.u32 %s918_s26, 5  ;;  %s644_s4 = sshll.u32 %s918_s26, 6  ;;  %v945_v15 = vshrl.u32 %v388_v14, 7  ;;  %v408_v17 = vand.u32 127, %v388_v14 }
  0x17   : > { %s219_s30 = scalar_lea.vmem %s1018_s1, %s643_s27  ;;  %s228_s7 = scalar_lea.vmem %s1019_s2, %s644_s4 }
  0x18   : > { %v249_v0 = vld [vmem:[%s219_s30 + $0x18] sm:$0xff]  ;;  %v248_v1 = vld [vmem:[%s219_s30 + $0x10] sm:$0xff]  ;;  %v247_v2 = vld [vmem:[%s219_s30 + $0x8] sm:$0xff]  ;;  %s940_s10 = scalar_lea.vmem %s1017_s0, %s918_s26  ;;  %v390_v16 = vadd.s32 8, %v945_v15  ;;  %v394_v18 = vadd.s32 40, %v945_v15  ;;  %v393_v19 = vadd.s32 32, %v945_v15  ;;  %vm409_vm4 = vcmp.eq.s32.totalorder %v945_v15, %v408_v17  ;;  %s531_s27 = scalar_lea.hbm %s1020_s3, %s640_s18 }
  0x19   : > { %657 = vmatprep.subr.mxu0 %v249_v0  ;;  %677 = vmatprep.subr.mxu1 %v249_v0  ;;  %v246_v3 = vld [vmem:[%s219_s30] sm:$0xff]  ;;  %v239_v6 = vld [vmem:[%s228_s7 + $0x8] sm:$0xff]  ;;  %v240_v8 = vld [vmem:[%s228_s7 + $0x10] sm:$0xff]  ;;  %v392_v22 = vadd.s32 24, %v945_v15  ;;  %v396_v23 = vadd.s32 56, %v945_v15  ;;  %v391_v29 = vadd.s32 16, %v945_v15  ;;  %p764_p0 = pneg %p763_p13 }
  0x1a   : > { %658 = vmatpush3.msra.mxu0 %v249_v0  ;;  %681 = vmatpush3.msra.mxu1 %v249_v0  ;;  %v238_v4 = vld [vmem:[%s228_s7] sm:$0xff]  ;;  %v243_v7 = vld [vmem:[%s228_s7 + $0x28] sm:$0xff]  ;;  %v244_v9 = vld [vmem:[%s228_s7 + $0x30] sm:$0xff]  ;;  %vm410_vm2 = vcmp.eq.s32.totalorder %v390_v16, %v408_v17  ;;  %vm414_vm3 = vcmp.eq.s32.totalorder %v394_v18, %v408_v17  ;;  %vm413_vm5 = vcmp.eq.s32.totalorder %v393_v19, %v408_v17  ;;  %v395_v33 = vadd.s32 48, %v945_v15  ;;  %s840_s30 = smov [#allocation4]  }
  0x1b   : > { %659 = vmatprep.subr.mxu0 %v248_v1  ;;  %678 = vmatprep.subr.mxu1 %v248_v1  ;;  %v242_v5 = vld [vmem:[%s228_s7 + $0x20] sm:$0xff]  ;;  %v241_v10 = vld [vmem:[%s228_s7 + $0x18] sm:$0xff]  ;;  %vm412_vm6 = vcmp.eq.s32.totalorder %v392_v22, %v408_v17  ;;  %vm416_vm7 = vcmp.eq.s32.totalorder %v396_v23, %v408_v17  ;;  %vm411_vm9 = vcmp.eq.s32.totalorder %v391_v29, %v408_v17  ;;  %s765_s4 = sshll.u32 %s840_s30, 4  ;;  %s766_s4 = int_to_ptr.vmem [resolvable:$false] %s765_s4 }
  0x1c   : > { %660 = vmatpush3.msra.mxu0 %v248_v1  ;;  %682 = vmatpush3.msra.mxu1 %v248_v1  ;;  %v245_v11 = vld [vmem:[%s228_s7 + $0x38] sm:$0xff]  ;;  %v234_v12 = vld [vmem:[%s940_s10] sm:$0x1]  ;;  %vm415_vm10 = vcmp.eq.s32.totalorder %v395_v33, %v408_v17  ;;  %s767_s15 = scalar_lea.vmem %s766_s4, 32  ;;  %p768_p1 = scmp.lt.s32.totalorder %s534_s21, %s766_s4 }
  0x1d   : > { %661 = vmatprep.subr.mxu0 %v247_v2  ;;  %679 = vmatprep.subr.mxu1 %v247_v2  ;;  %236 = vst.msk [vmem:[#allocation2] sm:$0x1] %vm235_vm1, %v234_v12  ;;  %p769_p2 = scmp.lt.s32.totalorder %s767_s15, %s761_s29 }
  0x1e   : > { %662 = vmatpush3.msra.mxu0 %v247_v2  ;;  %683 = vmatpush3.msra.mxu1 %v247_v2 }
  0x1f   : > { %663 = vmatprep.subr.mxu0 %v246_v3  ;;  %680 = vmatprep.subr.mxu1 %v246_v3  ;;  %p770_p3 = por %p769_p2, %p768_p1 }
  0x20   : > { %664 = vmatpush3.msra.mxu0 %v246_v3  ;;  %684 = vmatpush3.msra.mxu1 %v246_v3 }
  0x21   : > { %665 = vmatprep.mubr.msk.f32.mxu0 %vm250_vm0, %v238_v4  ;;  %671 = vmatprep.mubr.msk.f32.mxu1 %vm250_vm0, %v242_v5  ;;  %p771_p5 = pnand %p770_p3, %p764_p0 }
  0x22   : > { %666 = vmatmul.mubr.msk.f32.vlgmr.msra.gmra.mxu0 %vm250_vm0, %v239_v6  ;;  %672 = vmatmul.mubr.msk.f32.vlgmr.msra.gmra.mxu1 %vm250_vm0, %v243_v7  ;;  %v457_v6 = vsub.s32 0, %v945_v15 }
  0x23   : > { %668 = vmatprep.mubr.msk.f32.mxu0 %vm250_vm0, %v240_v8  ;;  %674 = vmatprep.mubr.msk.f32.mxu1 %vm250_vm0, %v244_v9 }
  0x24   : > { %v425_v4 = vld [vmem:[#allocation2] sm:$0x1] }
  0x26   : > { %669 = vmatmul.mubr.msk.f32.gmra.mxu0 %vm250_vm0, %v241_v10  ;;  %675 = vmatmul.mubr.msk.f32.gmra.mxu1 %vm250_vm0, %v245_v11 }
  0xe2   : > { %v667_v20 = vpop.f32.mrf.mxu0  ;;  %v673_v21 = vpop.f32.mrf.mxu1 }
  0xe3   : > { %v381_v24 = vmul.f32 14.285714, %v667_v20  ;;  %v385_v27 = vmul.f32 14.285714, %v673_v21 }
  0xe4   : > { %v341_v25 = vpop.f32.mrf.mxu0  ;;  %v361_v26 = vpop.f32.mrf.mxu1 }
  0xe5   : > { %v380_v28 = vmul.f32 14.285714, %v341_v25  ;;  %v384_v30 = vmul.f32 14.285714, %v361_v26  ;;  %v418_v37 = vsel %vm410_vm2, -142.85715, %v381_v24 }
  0xe6   : > { %v670_v31 = vpop.f32.mrf.mxu0  ;;  %v676_v32 = vpop.f32.mrf.mxu1  ;;  %v422_v41 = vsel %vm414_vm3, -142.85715, %v385_v27  ;;  %v428_v47 = vsel %vm426_vm8, %v418_v37, -inf }
  0xe7   : > { %v417_v34 = vsel %vm409_vm4, -142.85715, %v380_v28  ;;  %v383_v35 = vmul.f32 14.285714, %v670_v31  ;;  %v387_v36 = vmul.f32 14.285714, %v676_v32 }
  0xe8   : > { %v421_v38 = vsel %vm413_vm5, -142.85715, %v384_v30  ;;  %v351_v39 = vpop.f32.mrf.mxu0  ;;  %v371_v40 = vpop.f32.mrf.mxu1  ;;  %v427_v44 = vsel %vm426_vm8, %v417_v34, -inf  ;;  %v433_v49 = vsel %vm426_vm8, %v422_v41, -inf }
  0xe9   : > { %v420_v42 = vsel %vm412_vm6, -142.85715, %v383_v35  ;;  %v424_v43 = vsel %vm416_vm7, -142.85715, %v387_v36  ;;  %v431_v45 = vsel %vm426_vm8, %v421_v38, -inf  ;;  %v434_v57 = vmax.f32 %v428_v47, %v433_v49 }
  0xea   : > { %v382_v46 = vmul.f32 14.285714, %v351_v39  ;;  %v386_v48 = vmul.f32 14.285714, %v371_v40  ;;  %v430_v50 = vsel %vm426_vm8, %v420_v42, -inf  ;;  %v437_v51 = vsel %vm426_vm8, %v424_v43, -inf }
  0xeb   : > { %v432_v53 = vmax.f32 %v427_v44, %v431_v45  ;;  %v438_v58 = vmax.f32 %v430_v50, %v437_v51 }
  0xec   : > { %v419_v52 = vsel %vm411_vm9, -142.85715, %v382_v46  ;;  %v423_v55 = vsel %vm415_vm10, -142.85715, %v386_v48 }
  0xed   : > { %v429_v54 = vsel %vm426_vm8, %v419_v52, -inf  ;;  %v435_v56 = vsel %vm426_vm8, %v423_v55, -inf  ;;  %v439_v60 = vmax.f32 %v432_v53, %v434_v57 }
  0xee   : > { %v436_v59 = vmax.f32 %v429_v54, %v435_v56 }
  0xf0   : > { %v440_v61 = vmax.f32 %v436_v59, %v438_v58 }
  0xf2   : > { %v441_v62 = vmax.f32 %v439_v60, %v440_v61 }
  0xf4   : > { %v442_v63 = vrot.slane %v441_v62, 4 }
  0xf6   : > { %v443_v0 = vmax.f32 %v441_v62, %v442_v63 }
  0xf8   : > { %v444_v1 = vrot.slane %v443_v0, 2 }
  0xfa   : > { %v445_v2 = vmax.f32 %v443_v0, %v444_v1  ;;  %v517_v0 = vld [vmem:[%s940_s10] sm:$0x1] }
  0xfc   : > { %v446_v3 = vrot.slane %v445_v2, 1 }
  0xfe   : > { %v447_v5 = vmax.f32 %v445_v2, %v446_v3 }
 0x100   : > { %v448_v7 = vmax.f32 %v425_v4, %v447_v5 }
 0x102   : > { %v458_v8 = vrot.slane %v448_v7, %v457_v6  ;;  %508 = vst.msk [vmem:[#allocation2] sm:$0x1] %vm235_vm1, %v448_v7  ;;  %v450_v31 = vsub.f32 %v425_v4, %v448_v7 }
 0x104   : > { %v460_v9 = vsub.f32 %v417_v34, %v458_v8  ;;  %v461_v10 = vsub.f32 %v418_v37, %v458_v8  ;;  %v462_v11 = vsub.f32 %v419_v52, %v458_v8  ;;  %v463_v12 = vsub.f32 %v420_v42, %v458_v8 }
 0x105   : > { %v464_v13 = vsub.f32 %v421_v38, %v458_v8  ;;  %v465_v17 = vsub.f32 %v422_v41, %v458_v8  ;;  %v466_v20 = vsub.f32 %v423_v55, %v458_v8  ;;  %v467_v15 = vsub.f32 %v424_v43, %v458_v8  ;;  %v449_v55 = vld [vmem:[#allocation3] sm:$0x1] }
 0x106   : > { %v468_v14 = vmul.f32 1.442695, %v460_v9  ;;  %v470_v16 = vmul.f32 1.442695, %v461_v10  ;;  %v472_v18 = vmul.f32 1.442695, %v462_v11 }
 0x107   : > { %v474_v19 = vmul.f32 1.442695, %v463_v12  ;;  %v476_v21 = vmul.f32 1.442695, %v464_v13  ;;  %v478_v22 = vmul.f32 1.442695, %v465_v17 }
 0x108   : > { %741 = vpow2.f32 %v468_v14  ;;  %v480_v23 = vmul.f32 1.442695, %v466_v20  ;;  %v482_v24 = vmul.f32 1.442695, %v467_v15  ;;  %v451_v38 = vmul.f32 1.442695, %v450_v31 }
 0x109   : > { %743 = vpow2.f32 %v470_v16  ;;  %v512_v63 = vld [vmem:[#allocation2] sm:$0x1] }
 0x10a   : > { %745 = vpow2.f32 %v472_v18 }
 0x10b   : > { %747 = vpow2.f32 %v474_v19 }
 0x10c   : > { %749 = vpow2.f32 %v476_v21 }
 0x10d   : > { %751 = vpow2.f32 %v478_v22 }
 0x10e   : > { %753 = vpow2.f32 %v480_v23 }
 0x10f   : > { %755 = vpow2.f32 %v482_v24 }
 0x110   : > { %757 = vpow2.f32 %v451_v38 }
 0x115   : > { %v742_v25 = vpop.eup %741 }
 0x116   : > { %v744_v26 = vpop.eup %743  ;;  %v484_v27 = vsel %vm426_vm8, %v742_v25, 0.0 }
 0x117   : > { %v746_v28 = vpop.eup %745  ;;  %v485_v29 = vsel %vm426_vm8, %v744_v26, 0.0 }
 0x118   : > { %v748_v30 = vpop.eup %747  ;;  %v486_v32 = vadd.f32 %v485_v29, %v484_v27  ;;  %v487_v33 = vsel %vm426_vm8, %v746_v28, 0.0 }
 0x119   : > { %v750_v34 = vpop.eup %749  ;;  %v489_v36 = vsel %vm426_vm8, %v748_v30, 0.0 }
 0x11a   : > { %v488_v35 = vadd.f32 %v487_v33, %v486_v32  ;;  %v752_v37 = vpop.eup %751  ;;  %v491_v40 = vsel %vm426_vm8, %v750_v34, 0.0 }
 0x11b   : > { %v754_v41 = vpop.eup %753  ;;  %v493_v43 = vsel %vm426_vm8, %v752_v37, 0.0 }
 0x11c   : > { %v490_v39 = vadd.f32 %v489_v36, %v488_v35  ;;  %v756_v44 = vpop.eup %755  ;;  %v495_v46 = vsel %vm426_vm8, %v754_v41, 0.0 }
 0x11d   : > { %v497_v48 = vsel %vm426_vm8, %v756_v44, 0.0  ;;  %v758_v54 = vpop.eup %757 }
 0x11e   : > { %v492_v42 = vadd.f32 %v491_v40, %v490_v39  ;;  %v453_v57 = vmul.f32 %v758_v54, %v449_v55 }
 0x120   : > { %v494_v45 = vadd.f32 %v493_v43, %v492_v42 }
 0x122   : > { %v496_v47 = vadd.f32 %v495_v46, %v494_v45 }
 0x124   : > { %v498_v49 = vadd.f32 %v497_v48, %v496_v47 }
 0x126   : > { %v499_v50 = vrot.slane %v498_v49, 4 }
 0x128   : > { %v500_v51 = vadd.f32 %v499_v50, %v498_v49 }
 0x12a   : > { %v501_v52 = vrot.slane %v500_v51, 2 }
 0x12c   : > { %v502_v53 = vadd.f32 %v501_v52, %v500_v51 }
 0x12e   : > { %v503_v56 = vrot.slane %v502_v53, 1 }
 0x130   : > { %v504_v58 = vadd.f32 %v503_v56, %v502_v53 }
 0x132   : > { %v505_v59 = vadd.f32 %v504_v58, %v453_v57 }
 0x134   : > { %507 = vst.msk [vmem:[#allocation3] sm:$0x1] %vm235_vm1, %v505_v59 }
 0x13b   : > { %v513_v60 = vld [vmem:[#allocation3] sm:$0x1] }
 0x13c   : > { %759 = vlog2.f32 %v513_v60 }
 0x149   : > { %v760_v61 = vpop.eup %759 }
 0x14a   : > { %v515_v62 = vmul.f32 0.6931472, %v760_v61 }
 0x14c   : > { %v516_v1 = vadd.f32 %v515_v62, %v512_v63 }
 0x14e   : > { %v518_v2 = vsub.f32 %v516_v1, %v517_v0 }
 0x150   : > { %519 = vst.msk [vmem:[%s211_s19] sm:$0x1] %vm235_vm1, %v518_v2 }
 0x151   : > { %774 = shalt.err (!%p771_p5)
}
 0x152   : > { %s775_s5 = scalar_lea.hbm %s531_s27, 16  ;;  %s779_s8 = scalar_lea.hbm %s1020_s3, 32 }
 0x153   : > { %p776_p6 = scmp.ne.s32.totalorder %s531_s27, %s775_s5  ;;  %p780_p10 = scmp.lt.s32.totalorder %s531_s27, %s1020_s3 }
 0x154   : > { %p781_p11 = scmp.lt.s32.totalorder %s779_s8, %s775_s5 }
 0x155   : > { %p777_p7 = pnand %p776_p6, %p901_p4 }
 0x156   : > { %p782_p12 = por %p781_p11, %p780_p10 }
 0x157   : > { %p778_p9 = pneg %p777_p7 }
 0x159   : > { %p783_p13 = pnand %p782_p12, %p778_p9 }
 0x15b   : > { %786 = shalt.err (!%p783_p13)
}
 0x15c   : > { %685 = dma.vmem_to_hbm [thread:$0]  (%p901_p4), %s534_s21, 16, %s531_s27, %s521_s28  }
 0x15d PF: > { %p691_p0 = scmp.ge.s32.totalorder %s837_s17, 2  ;;  %s545_s11 = sand.u32 1, %s817_s12  }
 0x15e   : > { %s546_s18 = scalar_lea.sflag [#allocation5], %s545_s11 }
 0x15f   : > { %p688_p1 = pnand %p691_p0, %p908_p8 }
 0x161   : > { %p689_p2 = pneg %p688_p1 }
 0x163   : > { %812 = dma.done.wait (%p689_p2), %s546_s18, 16  }
 0x164   : > { %814 = vsyncadd (%p689_p2), %s546_s18, 4294967280  ;;  %s16_s17 = sadd.s32 1, %s837_s17   ;;  %s1023_s12 = smov %s821_s13 }
 0x165   : > { %p13_p3 = scmp.ge.s32.totalorder %s16_s17, 4   ;;  %s1024_s13 = smov %s825_s14 }
 0x166   : > { %s1025_s14 = smov %s914_s25  ;;  %s1026_s15 = smov %s833_s16 }
 0x167   : > { %s1027_s16 = smov %s1029_s20  ;;  %15 = sbr.rel (!%p13_p3) target bundleno = 4 (0x4), region = 81 }
 0x16c   :  { %550 = vsyncpa [#allocation5], 1 }
 0x16d   :  { %552 = vsyncpa [#allocation5 + $0x1], 1 }

</bundles_post_ra>
